<compile_context>
chip_gen: v6e
topology: v6e:2x2x1
jax: 0.10.0
libtpu: 0.0.40
codegen_flags: <defaults>
</compile_context>

<pallas_src>
import functools

import jax
import jax.numpy as jnp
from jax.experimental import pallas as pl
from jax.experimental.pallas import tpu as pltpu


# ---------------------------------------------------------------------------
# Kernel bodies
# ---------------------------------------------------------------------------
def _chunked_accumulate(acc_ref, x_ref, n_chunks, rem):
    """acc_ref (bB, C, 128) f32 += lane-chunked partial sums of x_ref.

    Pure VPU adds of 128-lane slices (static, lane-aligned slices of the VMEM
    tile); no XLU cross-lane reduce and no f32 copy of the whole tile.
    """
    for k in range(n_chunks):
        acc_ref[...] += x_ref[:, :, k * 128:(k + 1) * 128].astype(jnp.float32)
    if rem:
        acc_ref[:, :, :rem] += x_ref[:, :, n_chunks * 128:].astype(jnp.float32)


def _channel_sum_kernel(x_ref, sums_ref, acc_ref, *, n_chunks, rem):
    # x_ref:    (block_b, C, hw_tile) current spatial tile
    # sums_ref: (1, 1, block_b, C)    per-(super-chunk, batch-block) sums
    # acc_ref:  (block_b, C, 128)     f32 chunk accumulator (VMEM scratch)
    j = pl.program_id(2)

    @pl.when(j == 0)
    def _():
        acc_ref[...] = jnp.zeros_like(acc_ref)

    _chunked_accumulate(acc_ref, x_ref, n_chunks, rem)

    @pl.when(j == pl.num_programs(2) - 1)
    def _():
        # single cross-lane reduce per batch-block (XLU, once per super-chunk)
        sums_ref[0, 0] = jnp.sum(acc_ref[...], axis=-1)


def _excite_kernel(mean_ref, w1t_ref, b1_ref, w2t_ref, b2_ref, g_ref):
    # mean_ref: (B, C) f32 channel means; weights pre-transposed in wrapper.
    mean = mean_ref[...]
    h = jnp.dot(mean, w1t_ref[...].astype(jnp.float32),
                preferred_element_type=jnp.float32) + b1_ref[...]
    h = jnp.maximum(h, 0.0)
    z = jnp.dot(h, w2t_ref[...].astype(jnp.float32),
                preferred_element_type=jnp.float32) + b2_ref[...]
    g_ref[...] = jax.nn.sigmoid(z).astype(g_ref.dtype)


def _scale_kernel(x_ref, g_ref, o_ref):
    # Gate already in x.dtype -> no per-step cast; pure streaming multiply.
    o_ref[...] = x_ref[...] * g_ref[0][:, :, None]


def _fused_se_kernel(x_ref, w1t_ref, b1_ref, w2t_ref, b2_ref, o_ref, acc_ref,
                     *, inv_hw, n_chunks, rem):
    # Single-pass SE for small-HW stages: x block stays resident in VMEM.
    acc_ref[...] = jnp.zeros_like(acc_ref)
    _chunked_accumulate(acc_ref, x_ref, n_chunks, rem)
    mean = jnp.sum(acc_ref[...], axis=-1) * inv_hw                 # (bB, C)
    h = jnp.dot(mean, w1t_ref[...].astype(jnp.float32),
                preferred_element_type=jnp.float32) + b1_ref[...]
    h = jnp.maximum(h, 0.0)
    z = jnp.dot(h, w2t_ref[...].astype(jnp.float32),
                preferred_element_type=jnp.float32) + b2_ref[...]
    g = jax.nn.sigmoid(z).astype(o_ref.dtype)
    o_ref[...] = x_ref[...] * g[:, :, None]


# ---------------------------------------------------------------------------
# Planning helpers
# ---------------------------------------------------------------------------
def _largest_divisor_leq(n, cap):
    cap = max(1, min(n, cap))
    for d in range(cap, 0, -1):
        if n % d == 0:
            return d
    return 1


def _vmem_budget():
    """Generation-aware (vmem_limit_bytes, target_tile_bytes)."""
    cap = 128 << 20
    try:
        info = pltpu.get_tpu_info()
        cap = int(getattr(info, "vmem_capacity_bytes", cap) or cap)
    except Exception:  # interpret mode / unknown backend: assume 128 MiB part
        pass
    if cap <= (64 << 20):
        # v7x-class: 64 MiB per TensorCore -> leave Mosaic scratch headroom.
        return min(cap, 52 << 20), 4 << 20
    # v5e / v6e: 128 MiB physical VMEM.
    return min(cap - (28 << 20), 100 << 20), 6 << 20


def _plan_tiles(B, C, HW, itemsize, target_tile_bytes):
    """Pick (block_b, hw_tile, pad) for the two-pass path.

    hw_tile is a multiple of 128 (lane-dense, unmasked stores) or the full
    (possibly ragged) HW extent; `pad` (rare) rounds HW up to a multiple of
    128 when even a block_b=1 full-HW tile would blow the byte budget.
    """
    block_b = _largest_divisor_leq(B, 8)

    if HW % 128 != 0:
        # Ragged spatial extent: prefer full-HW tiles with a co-tuned batch
        # block (no padded copy of x in HBM).
        bb = block_b
        while bb > 1 and bb * C * HW * itemsize > target_tile_bytes:
            bb = _largest_divisor_leq(B, bb - 1)
        if bb * C * HW * itemsize <= 2 * target_tile_bytes:
            return bb, HW, 0
        pad = (-HW) % 128
    else:
        pad = 0

    hw_pad = HW + pad
    # Shrink the batch block until the minimal (128-lane) tile fits the budget
    # (matters for very wide C).
    while block_b > 1 and block_b * C * 128 * itemsize > target_tile_bytes:
        block_b = _largest_divisor_leq(B, block_b - 1)
    cap = max(128, (target_tile_bytes // (block_b * C * itemsize)) // 128 * 128)
    hw_tile = min(hw_pad, cap)
    while hw_pad % hw_tile != 0:
        hw_tile -= 128
    return block_b, hw_tile, pad


# ---------------------------------------------------------------------------
# Forward wrapper
# ---------------------------------------------------------------------------
def se_forward(x, w1, b1, w2, b2, *, fuse=None, target_tile_bytes=None):
    """SE forward: x * sigmoid(fc2(relu(fc1(mean_HW(x))))).

    x: (B, C, H, W); w1: (C_red, C); b1: (C_red,); w2: (C, C_red); b2: (C,).
    `fuse=None` auto-selects the fused single-pass path when it fits VMEM.
    """
    B, C, H, W = x.shape
    HW = H * W
    C_red = w1.shape[0]
    itemsize = x.dtype.itemsize

    x_flat = x.reshape(B, C, HW)
    # Pre-transpose weights ONCE in the wrapper; kernels never transpose.
    w1t = jnp.transpose(w1)                     # (C, C_red)
    w2t = jnp.transpose(w2)                     # (C_red, C)
    b1_2d = b1.reshape(1, C_red).astype(jnp.float32)
    b2_2d = b2.reshape(1, C).astype(jnp.float32)

    vmem_limit, default_target = _vmem_budget()
    if target_tile_bytes is None:
        target_tile_bytes = default_target

    # Double-buffered residency of the (pre-transposed) SE weights + biases.
    w_resident = 2 * (w1t.size * w1t.dtype.itemsize
                      + w2t.size * w2t.dtype.itemsize
                      + b1_2d.size * 4 + b2_2d.size * 4)

    # ---------------- fused single-pass path (small-HW stages) --------------
    want_fused = fuse in (None, True)
    use_fused = False
    fb = 1
    if want_fused:
        fb = _largest_divisor_leq(B, 8)
        if B >= 2:  # keep v7x's second TensorCore busy (>= 2 parallel blocks)
            fb = min(fb, _largest_divisor_leq(B, max(1, B // 2)))

        def fused_bytes(bb):
            x_blk = bb * C * HW * itemsize
            return 4 * x_blk + bb * C * 128 * 4 + w_resident  # 2x in + 2x out

        while fb > 1 and fused_bytes(fb) > vmem_limit - (6 << 20):
            fb = _largest_divisor_leq(B, fb - 1)
        use_fused = fused_bytes(fb) <= vmem_limit - (6 << 20)

    if use_fused:
        n_chunks, rem = divmod(HW, 128)
        out_flat = pl.pallas_call(
            functools.partial(_fused_se_kernel, inv_hw=1.0 / HW,
                              n_chunks=n_chunks, rem=rem),
            out_shape=jax.ShapeDtypeStruct((B, C, HW), x.dtype),
            grid_spec=pltpu.PrefetchScalarGridSpec(
                num_scalar_prefetch=0,
                grid=(B // fb,),
                in_specs=[
                    pl.BlockSpec((fb, C, HW), lambda i: (i, 0, 0)),
                    pl.BlockSpec((C, C_red), lambda i: (0, 0)),
                    pl.BlockSpec((1, C_red), lambda i: (0, 0)),
                    pl.BlockSpec((C_red, C), lambda i: (0, 0)),
                    pl.BlockSpec((1, C), lambda i: (0, 0)),
                ],
                out_specs=pl.BlockSpec((fb, C, HW), lambda i: (i, 0, 0)),
                scratch_shapes=[pltpu.VMEM((fb, C, 128), jnp.float32)],
            ),
            compiler_params=pltpu.CompilerParams(
                dimension_semantics=("parallel",),
                vmem_limit_bytes=vmem_limit,
            ),
        )(x_flat, w1t, b1_2d, w2t, b2_2d)
        return out_flat.reshape(B, C, H, W)

    # ---------------- two-pass path (large-HW stages) ------------------------
    block_b, hw_tile, pad = _plan_tiles(B, C, HW, itemsize, target_tile_bytes)
    HWp = HW + pad
    if pad:
        # TODO(synk): the pad costs one extra HBM read+write of x; only taken
        # when even a block_b=1 full-HW ragged tile would blow the VMEM budget.
        x_flat = jnp.pad(x_flat, ((0, 0), (0, 0), (0, pad)))

    n_b = B // block_b
    n_hw = HWp // hw_tile
    # If the batch axis has only one block, split the HW axis into two
    # "parallel" super-chunks of partial sums so both v7x TensorCores work.
    n_super = 2 if (n_b < 2 and n_hw >= 2 and n_hw % 2 == 0) else 1
    n_hw_inner = n_hw // n_super
    n_chunks, rem = divmod(hw_tile, 128)

    # Pass 1: per-(super-chunk, batch-block) channel sums. No SE weights here.
    sums = pl.pallas_call(
        functools.partial(_channel_sum_kernel, n_chunks=n_chunks, rem=rem),
        out_shape=jax.ShapeDtypeStruct((n_super, n_b, block_b, C), jnp.float32),
        grid_spec=pltpu.PrefetchScalarGridSpec(
            num_scalar_prefetch=0,
            grid=(n_b, n_super, n_hw_inner),        # reduction axis innermost
            in_specs=[pl.BlockSpec(
                (block_b, C, hw_tile),
                lambda i, s, j: (i, 0, s * n_hw_inner + j))],
            out_specs=pl.BlockSpec((1, 1, block_b, C),
                                   lambda i, s, j: (s, i, 0, 0)),
            scratch_shapes=[pltpu.VMEM((block_b, C, 128), jnp.float32)],
        ),
        compiler_params=pltpu.CompilerParams(
            dimension_semantics=("parallel", "parallel", "arbitrary"),
            vmem_limit_bytes=vmem_limit,
        ),
    )(x_flat)

    # Combine partial sums -> per-channel means. Tiny (B, C)-sized op (free
    # leading-dim reshape when n_super == 1); padded zeros cancel because we
    # divide by the true HW.
    mean = (jnp.sum(sums, axis=0).reshape(B, C) * (1.0 / HW)).astype(jnp.float32)

    # Excitation MLP on the full batch (M = B), gate emitted in x.dtype.
    mlp_bytes = w_resident + 4 * B * C * 4
    if mlp_bytes <= vmem_limit - (4 << 20):
        gate = pl.pallas_call(
            _excite_kernel,
            out_shape=jax.ShapeDtypeStruct((B, C), x.dtype),
            grid_spec=pltpu.PrefetchScalarGridSpec(
                num_scalar_prefetch=0,
                grid=(1,),
                in_specs=[
                    pl.BlockSpec((B, C), lambda i: (0, 0)),
                    pl.BlockSpec((C, C_red), lambda i: (0, 0)),
                    pl.BlockSpec((1, C_red), lambda i: (0, 0)),
                    pl.BlockSpec((C_red, C), lambda i: (0, 0)),
                    pl.BlockSpec((1, C), lambda i: (0, 0)),
                ],
                out_specs=pl.BlockSpec((B, C), lambda i: (0, 0)),
            ),
            compiler_params=pltpu.CompilerParams(
                dimension_semantics=("arbitrary",),
                vmem_limit_bytes=vmem_limit,
            ),
        )(mean, w1t, b1_2d, w2t, b2_2d)
    else:
        # TODO(synk): huge-C fallback — run the tiny (B, C) MLP in plain XLA so
        # the dense SE weights never occupy VMEM; the streaming passes that
        # touch the full activation slab remain Pallas kernels.
        h = jax.nn.relu(mean @ w1t.astype(jnp.float32) + b1_2d)
        gate = jax.nn.sigmoid(h @ w2t.astype(jnp.float32) + b2_2d).astype(x.dtype)

    gate3 = gate.reshape(n_b, block_b, C)       # free major-dim split

    # Pass 2: lane-dense streaming scale in x's native dtype.
    out_flat = pl.pallas_call(
        _scale_kernel,
        out_shape=jax.ShapeDtypeStruct((B, C, HWp), x.dtype),
        grid_spec=pltpu.PrefetchScalarGridSpec(
            num_scalar_prefetch=0,
            grid=(n_b, n_hw),
            in_specs=[
                pl.BlockSpec((block_b, C, hw_tile), lambda i, j: (i, 0, j)),
                pl.BlockSpec((1, block_b, C), lambda i, j: (i, 0, 0)),
            ],
            out_specs=pl.BlockSpec((block_b, C, hw_tile), lambda i, j: (i, 0, j)),
        ),
        compiler_params=pltpu.CompilerParams(
            dimension_semantics=("parallel", "parallel"),
            vmem_limit_bytes=vmem_limit,
        ),
    )(x_flat, gate3)

    if pad:
        out_flat = out_flat[:, :, :HW]
    return out_flat.reshape(B, C, H, W)


# ---------------------------------------------------------------------------
# Reference & self-test
# ---------------------------------------------------------------------------
def se_reference(x, w1, b1, w2, b2):
    """Pure-JAX f32 reference mirroring the PyTorch SE forward."""
    B, C, H, W = x.shape
    xf = x.astype(jnp.float32)
    sq = xf.reshape(B, C, -1).mean(axis=2)                            # (B, C)
    h = jax.nn.relu(sq @ w1.astype(jnp.float32).T + b1.astype(jnp.float32))
    g = jax.nn.sigmoid(h @ w2.astype(jnp.float32).T + b2.astype(jnp.float32))
    return xf * g[:, :, None, None]


if __name__ == "__main__":
    root_key = jax.random.PRNGKey(0)

    def make_case(key, B, C, H, W, reduction, x_dtype):
        C_red = max(1, C // reduction)
        k_x, k_w1, k_b1, k_w2, k_b2 = jax.random.split(key, 5)
        x = jax.random.normal(k_x, (B, C, H, W), dtype=jnp.float32).astype(x_dtype)
        w1 = jax.random.normal(k_w1, (C_red, C), dtype=jnp.float32) * 0.1
        b1 = jax.random.normal(k_b1, (C_red,), dtype=jnp.float32) * 0.1
        w2 = jax.random.normal(k_w2, (C, C_red), dtype=jnp.float32) * 0.1
        b2 = jax.random.normal(k_b2, (C,), dtype=jnp.float32) * 0.1
        return x, w1, b1, w2, b2

    def run_case(name, key, B, C, H, W, x_dtype, tol, **kwargs):
        x, w1, b1, w2, b2 = make_case(key, B, C, H, W, 2, x_dtype)
        out = jax.block_until_ready(se_forward(x, w1, b1, w2, b2, **kwargs))
        ref = se_reference(x, w1, b1, w2, b2)
        assert out.shape == ref.shape, name
        err = float(jnp.max(jnp.abs(out.astype(jnp.float32) - ref)))
        assert err <= tol, f"{name}: max abs err {err} > {tol}"

    keys = jax.random.split(root_key, 4)
    # Fused single-pass path (small HW, multiple of 128).
    run_case("fused_f32", keys[0], 2, 4, 16, 16, jnp.float32, 1e-4)
    # Two-pass path, ragged spatial extent (HW = 324, not a multiple of 128).
    run_case("twopass_ragged_f32", keys[1], 2, 8, 18, 18, jnp.float32, 1e-4,
             fuse=False)
    # Two-pass path, tiled HW + super-chunk split of the reduction axis.
    run_case("twopass_tiled_f32", keys[2], 2, 8, 32, 32, jnp.float32, 1e-4,
             fuse=False, target_tile_bytes=8 * 1024)
    # Fused path with bf16 activations (gate cast to bf16 inside the kernel).
    run_case("fused_bf16", keys[3], 2, 4, 16, 16, jnp.bfloat16, 5e-2)

    print("KERNEL_OK")
</pallas_src>

<mosaic_0001>
module attributes {stable_mosaic.version = 11 : i64} {
  func.func @_fused_se_kernel(%arg0: i32, %arg1: memref<1x4x256xf32, #tpu.memory_space<vmem>>, %arg2: memref<4x2xf32, #tpu.memory_space<vmem>>, %arg3: memref<1x2xf32, #tpu.memory_space<vmem>>, %arg4: memref<2x4xf32, #tpu.memory_space<vmem>>, %arg5: memref<1x4xf32, #tpu.memory_space<vmem>>, %arg6: memref<1x4x256xf32, #tpu.memory_space<vmem>>, %arg7: memref<1x4x128xf32, #tpu.memory_space<vmem>>) attributes {dimension_semantics = [#tpu.dimension_semantics<parallel>], iteration_bounds = array<i64: 2>, scalar_prefetch = 0 : i64, scratch_operands = 1 : i64, tpu.core_type = #tpu.core_type<tc>, window_params = [{transform_indices = @transform_0, window_bounds = array<i64: 1, 4, 256>}, {pipeline_mode = #tpu.pipeline_mode<synchronous>, transform_indices = @transform_1, window_bounds = array<i64: 4, 2>}, {pipeline_mode = #tpu.pipeline_mode<synchronous>, transform_indices = @transform_2, window_bounds = array<i64: 1, 2>}, {pipeline_mode = #tpu.pipeline_mode<synchronous>, transform_indices = @transform_3, window_bounds = array<i64: 2, 4>}, {pipeline_mode = #tpu.pipeline_mode<synchronous>, transform_indices = @transform_4, window_bounds = array<i64: 1, 4>}, {transform_indices = @transform_5, window_bounds = array<i64: 1, 4, 256>}]} {
    %cst = arith.constant 0.000000e+00 : f32
    %0 = vector.broadcast %cst : f32 to vector<1x4x128xf32>
    %c0 = arith.constant 0 : index
    %c0_0 = arith.constant 0 : index
    %c0_1 = arith.constant 0 : index
    %1 = vector.load %arg7[%c0, %c0_0, %c0_1] : memref<1x4x128xf32, #tpu.memory_space<vmem>>, vector<1x4x128xf32>
    tpu.vector_store %arg7[%c0, %c0_0, %c0_1], %0 {strides = array<i32>} : memref<1x4x128xf32, #tpu.memory_space<vmem>>, vector<1x4x128xf32>,
    %c0_2 = arith.constant 0 : index
    %c0_3 = arith.constant 0 : index
    %c0_4 = arith.constant 0 : index
    %2 = vector.load %arg7[%c0_2, %c0_3, %c0_4] : memref<1x4x128xf32, #tpu.memory_space<vmem>>, vector<1x4x128xf32>
    %c0_5 = arith.constant 0 : index
    %c0_6 = arith.constant 0 : index
    %c0_7 = arith.constant 0 : index
    %3 = vector.load %arg1[%c0_5, %c0_6, %c0_7] : memref<1x4x256xf32, #tpu.memory_space<vmem>>, vector<1x4x128xf32>
    %4 = arith.addf %2, %3 : vector<1x4x128xf32>
    %c0_8 = arith.constant 0 : index
    %c0_9 = arith.constant 0 : index
    %c0_10 = arith.constant 0 : index
    %5 = vector.load %arg7[%c0_8, %c0_9, %c0_10] : memref<1x4x128xf32, #tpu.memory_space<vmem>>, vector<1x4x128xf32>
    tpu.vector_store %arg7[%c0_8, %c0_9, %c0_10], %4 {strides = array<i32>} : memref<1x4x128xf32, #tpu.memory_space<vmem>>, vector<1x4x128xf32>,
    %c0_11 = arith.constant 0 : index
    %c0_12 = arith.constant 0 : index
    %c0_13 = arith.constant 0 : index
    %6 = vector.load %arg7[%c0_11, %c0_12, %c0_13] : memref<1x4x128xf32, #tpu.memory_space<vmem>>, vector<1x4x128xf32>
    %c0_14 = arith.constant 0 : index
    %c0_15 = arith.constant 0 : index
    %c128 = arith.constant 128 : index
    %7 = vector.load %arg1[%c0_14, %c0_15, %c128] : memref<1x4x256xf32, #tpu.memory_space<vmem>>, vector<1x4x128xf32>
    %8 = arith.addf %6, %7 : vector<1x4x128xf32>
    %c0_16 = arith.constant 0 : index
    %c0_17 = arith.constant 0 : index
    %c0_18 = arith.constant 0 : index
    %9 = vector.load %arg7[%c0_16, %c0_17, %c0_18] : memref<1x4x128xf32, #tpu.memory_space<vmem>>, vector<1x4x128xf32>
    tpu.vector_store %arg7[%c0_16, %c0_17, %c0_18], %8 {strides = array<i32>} : memref<1x4x128xf32, #tpu.memory_space<vmem>>, vector<1x4x128xf32>,
    %c0_19 = arith.constant 0 : index
    %c0_20 = arith.constant 0 : index
    %c0_21 = arith.constant 0 : index
    %10 = vector.load %arg7[%c0_19, %c0_20, %c0_21] : memref<1x4x128xf32, #tpu.memory_space<vmem>>, vector<1x4x128xf32>
    %cst_22 = arith.constant dense<0.000000e+00> : vector<1x4xf32>
    %11 = vector.multi_reduction <add>, %10, %cst_22 [2] : vector<1x4x128xf32> to vector<1x4xf32>
    %cst_23 = arith.constant 3.906250e-03 : f32
    %12 = vector.broadcast %cst_23 : f32 to vector<1x4xf32>
    %13 = arith.mulf %11, %12 : vector<1x4xf32>
    %c0_24 = arith.constant 0 : index
    %c0_25 = arith.constant 0 : index
    %14 = vector.load %arg2[%c0_24, %c0_25] : memref<4x2xf32, #tpu.memory_space<vmem>>, vector<4x2xf32>
    %cst_26 = arith.constant dense<0.000000e+00> : vector<1x2xf32>
    %15 = tpu.matmul %13, %14, %cst_26 {dimension_numbers = #tpu.dot_dimension_numbers<[1], [0], [0], [1], [0, 0, 1, 1], [], []>} : vector<1x4xf32>, vector<4x2xf32>, vector<1x2xf32> -> vector<1x2xf32>
    %c0_27 = arith.constant 0 : index
    %c0_28 = arith.constant 0 : index
    %16 = vector.load %arg3[%c0_27, %c0_28] : memref<1x2xf32, #tpu.memory_space<vmem>>, vector<1x2xf32>
    %17 = arith.addf %15, %16 : vector<1x2xf32>
    %cst_29 = arith.constant 0.000000e+00 : f32
    %18 = vector.broadcast %cst_29 : f32 to vector<1x2xf32>
    %19 = arith.maximumf %17, %18 : vector<1x2xf32>
    %c0_30 = arith.constant 0 : index
    %c0_31 = arith.constant 0 : index
    %20 = vector.load %arg4[%c0_30, %c0_31] : memref<2x4xf32, #tpu.memory_space<vmem>>, vector<2x4xf32>
    %cst_32 = arith.constant dense<0.000000e+00> : vector<1x4xf32>
    %21 = tpu.matmul %19, %20, %cst_32 {dimension_numbers = #tpu.dot_dimension_numbers<[1], [0], [0], [1], [0, 0, 1, 1], [], []>} : vector<1x2xf32>, vector<2x4xf32>, vector<1x4xf32> -> vector<1x4xf32>
    %c0_33 = arith.constant 0 : index
    %c0_34 = arith.constant 0 : index
    %22 = vector.load %arg5[%c0_33, %c0_34] : memref<1x4xf32, #tpu.memory_space<vmem>>, vector<1x4xf32>
    %23 = arith.addf %21, %22 : vector<1x4xf32>
    %24 = arith.negf %23 : vector<1x4xf32>
    %25 = math.exp %24 : vector<1x4xf32>
    %cst_35 = arith.constant 1.000000e+00 : f32
    %26 = vector.broadcast %cst_35 : f32 to vector<1x4xf32>
    %27 = arith.addf %26, %25 : vector<1x4xf32>
    %28 = arith.divf %26, %27 : vector<1x4xf32>
    %c0_36 = arith.constant 0 : index
    %c0_37 = arith.constant 0 : index
    %c0_38 = arith.constant 0 : index
    %29 = vector.load %arg1[%c0_36, %c0_37, %c0_38] : memref<1x4x256xf32, #tpu.memory_space<vmem>>, vector<1x4x256xf32>
    %30 = vector.shape_cast %28 : vector<1x4xf32> to vector<1x4x1xf32>
    %31 = vector.broadcast %30 : vector<1x4x1xf32> to vector<1x4x256xf32>
    %32 = arith.mulf %29, %31 : vector<1x4x256xf32>
    %c0_39 = arith.constant 0 : index
    %c0_40 = arith.constant 0 : index
    %c0_41 = arith.constant 0 : index
    %33 = vector.load %arg6[%c0_39, %c0_40, %c0_41] : memref<1x4x256xf32, #tpu.memory_space<vmem>>, vector<1x4x256xf32>
    tpu.vector_store %arg6[%c0_39, %c0_40, %c0_41], %32 {strides = array<i32>} : memref<1x4x256xf32, #tpu.memory_space<vmem>>, vector<1x4x256xf32>,
    return
  }
  func.func @transform_0(%arg0: i32) -> (i32, i32, i32) {
    %c0_i32 = arith.constant 0 : i32
    %c0_i32_0 = arith.constant 0 : i32
    %c0_i32_1 = arith.constant 0 : i32
    return %arg0, %c0_i32, %c0_i32_0 : i32, i32, i32
  }
  func.func @transform_1(%arg0: i32) -> (i32, i32) {
    %c0_i32 = arith.constant 0 : i32
    %c0_i32_0 = arith.constant 0 : i32
    %c0_i32_1 = arith.constant 0 : i32
    return %c0_i32, %c0_i32_0 : i32, i32
  }
  func.func @transform_2(%arg0: i32) -> (i32, i32) {
    %c0_i32 = arith.constant 0 : i32
    %c0_i32_0 = arith.constant 0 : i32
    %c0_i32_1 = arith.constant 0 : i32
    return %c0_i32, %c0_i32_0 : i32, i32
  }
  func.func @transform_3(%arg0: i32) -> (i32, i32) {
    %c0_i32 = arith.constant 0 : i32
    %c0_i32_0 = arith.constant 0 : i32
    %c0_i32_1 = arith.constant 0 : i32
    return %c0_i32, %c0_i32_0 : i32, i32
  }
  func.func @transform_4(%arg0: i32) -> (i32, i32) {
    %c0_i32 = arith.constant 0 : i32
    %c0_i32_0 = arith.constant 0 : i32
    %c0_i32_1 = arith.constant 0 : i32
    return %c0_i32, %c0_i32_0 : i32, i32
  }
  func.func @transform_5(%arg0: i32) -> (i32, i32, i32) {
    %c0_i32 = arith.constant 0 : i32
    %c0_i32_0 = arith.constant 0 : i32
    %c0_i32_1 = arith.constant 0 : i32
    return %arg0, %c0_i32, %c0_i32_0 : i32, i32, i32
  }
}

</mosaic_0001>

<bundles_post_ra>
// kernel: tpu_custom_call.1
= control target key start
LH: loop header
LB: loop body
LE: loop exit
PB: predicated region body
PF: predicated region fallthrough
CT: control target
= control target key end

     0   :  { %10 = vsyncpa [#allocation4], 0  ;;  %s911_s0 = inlined_call_operand.hbm [shape: f32[2,4,256], index: 0, kind: input, shape index: {}]   ;;  %s912_s1 = inlined_call_operand.vmem [shape: f32[4,2], index: 1, kind: input, shape index: {}]   ;;  %s913_s2 = inlined_call_operand.vmem [shape: f32[1,2], index: 2, kind: input, shape index: {}]   ;;  %s914_s3 = inlined_call_operand.vmem [shape: f32[2,4], index: 3, kind: input, shape index: {}]   ;;  %s915_s4 = inlined_call_operand.vmem [shape: f32[1,4], index: 4, kind: input, shape index: {}]   ;;  %s916_s5 = inlined_call_operand.hbm [shape: f32[2,4,256], index: 5, kind: output, shape index: {}]  }
   0x1   :  { %12 = vsyncpa [#allocation4 + $0x1], 0 }
   0x2   :  { %13 = vsyncpa [#allocation5], 0 }
   0x3   :  { %15 = vsyncpa [#allocation5 + $0x1], 0  ;;  %s749_s18 = smov 0   ;;  %s751_s19 = smov 0  }
   0x4   :  { %s753_s20 = smov 0   ;;  %s755_s21 = smov 0  }
   0x5 LB: > { %s770_s22 = sadd.s32 4294967295, %s712_s21   ;;  %s532_s23 = sadd.s32 4294967294, %s712_s21   ;;  %s712_s21 = sphi %s755_s21, %s933_s21   ;;  %s708_s20 = sphi %s753_s20, %s932_s20   ;;  %s704_s19 = sphi %s751_s19, %s931_s19   ;;  %s700_s18 = sphi %s749_s18, %s930_s18  }
   0x6   : > { %s774_s24 = sadd.s32 1, %s712_s21   ;;  %s28_s25 = sadd.s32 1, %s708_s20 }
   0x7   : > { %s25_s26 = ssub.s32 %s712_s21, %s774_s24  ;;  %p35_p0 = scmp.ne.s32.totalorder %s708_s20, %s704_s19 }
   0x8   : > { %p26_p1 = scmp.eq.s32.totalorder %s25_s26, 0  ;;  %p36_p2 = scmp.eq.s32.totalorder %s712_s21, 0 }
   0x9   : > { %p41_p3 = scmp.ne.s32.totalorder %s704_s19, %s700_s18  ;;  %p42_p4 = scmp.eq.s32.totalorder %s770_s22, 0 }
   0xa   : > { %s786_s27 = scalar_select %p26_p1, %s708_s20, %s28_s25  }
   0xb   : > { %p788_p5 = por %p36_p2, %p35_p0  ;;  %p792_p6 = por %p42_p4, %p41_p3 }
   0xc   : > { %p149_p7 = scmp.eq.s32.totalorder %s770_s22, 1  ;;  %p155_p8 = scmp.eq.s32.totalorder %s532_s23, 1 }
   0xd   : > { %s920_s29 = scalar_select %p792_p6, 1, 0 }
   0xe   : > { %p579_p10 = scmp.lt.s32.totalorder %s712_s21, 2  ;;  %p799_p11 = por %p149_p7, %p35_p0 }
   0xf   : > { %p803_p12 = por %p155_p8, %p41_p3  ;;  %s187_s7 = sand.u32 1, %s708_s20  }
  0x10   : > { %s921_s30 = scalar_select %p799_p11, 1, 0 }
  0x11   : > { %s922_s6 = scalar_select %p803_p12, 1, 0 }
  0x12   : > { %s551_s8 = sshll.u32 %s712_s21, 7  ;;  %s535_s9 = sshll.u32 %s187_s7, 3 }
  0x13   : > { %s812_s12 = scalar_lea.hbm %s911_s0, %s551_s8  ;;  %s191_s13 = scalar_lea.vmem [#allocation3], %s535_s9 }
  0x14   : > { %s199_s14 = sshll.u32 %s191_s13, 4  ;;  %p816_p13 = pnand %p579_p10, %p788_p5  ;;  %s820_s14 = int_to_ptr.vmem [resolvable:$true] %s199_s14 }
  0x15   : > { %s188_s16 = scalar_lea.sflag [#allocation4], %s187_s7  ;;  %s620_s17 = scalar_lea.hbm %s812_s12, 128 }
  0x16   : > { %p621_p2 = scmp.ne.s32.totalorder %s812_s12, %s620_s17  ;;  %p622_p3 = pneg %p816_p13 }
  0x17   : > { %s625_s26 = scalar_lea.hbm %s911_s0, 256  ;;  %p626_p5 = scmp.lt.s32.totalorder %s812_s12, %s911_s0 }
  0x18   : > { %p623_p4 = pnand %p622_p3, %p621_p2  ;;  %p627_p8 = scmp.lt.s32.totalorder %s625_s26, %s620_s17 }
  0x1a   : > { %p624_p7 = pneg %p623_p4  ;;  %p628_p10 = por %p627_p8, %p626_p5 }
  0x1c   : > { %p629_p9 = pnand %p628_p10, %p624_p7 }
  0x1e   : > { %632 = shalt.err (!%p629_p9)
}
  0x1f   : > { %s633_s7 = scalar_lea.vmem %s820_s14, 128  ;;  %s714_s9 = smov [#allocation3]  }
  0x20   : > { %p634_p0 = scmp.ne.s32.totalorder %s820_s14, %s633_s7  ;;  %s638_s10 = sshll.u32 %s714_s9, 4  ;;  %s639_s10 = int_to_ptr.vmem [resolvable:$false] %s638_s10 }
  0x21   : > { %s640_s11 = scalar_lea.vmem %s639_s10, 256  ;;  %p641_p4 = scmp.lt.s32.totalorder %s820_s14, %s639_s10 }
  0x22   : > { %p636_p1 = pnand %p634_p0, %p622_p3  ;;  %p642_p12 = scmp.lt.s32.totalorder %s640_s11, %s633_s7 }
  0x24   : > { %p637_p2 = pneg %p636_p1  ;;  %p643_p11 = por %p642_p12, %p641_p4 }
  0x26   : > { %p644_p6 = pnand %p643_p11, %p637_p2 }
  0x28   : > { %647 = shalt.err (!%p644_p6)
}
  0x29   : > { %574 = dma.hbm_to_vmem [thread:$0]  (!%p816_p13), %s812_s12, 128, %s820_s14, %s188_s16  }
  0x2a   : > { %p924_p9 = scmp.lt.s32.totalorder %s712_s21, 3  ;;  %p925_p7 = scmp.ge.s32.totalorder %s712_s21, 1 }
  0x2c   : > { %p205_p0 = pnand %p925_p7, %p924_p9 }
  0x2d   : > { %s847_s13 = sand.u32 (!%p205_p0), 1, %s704_s19   ;;  %p926_p6 = scmp.ne.s32.totalorder (!%p205_p0), %s920_s29, 0 }
  0x2e   : > { %208 = sbr.rel (%p205_p0) target bundleno = 782 (0x30e), region = 40  ;;  %s539_s17 = sshll.u32 (!%p205_p0), %s847_s13, 3 }
  0x2f   : > { %s211_s23 = scalar_lea.sflag (!%p205_p0), [#allocation4], %s847_s13  ;;  %s853_s15 = scalar_lea.vmem (!%p205_p0), [#allocation3], %s539_s17 }
  0x33   : > { %691 = dma.done.wait (%p926_p6), %s211_s23, 128  }
  0x34   : > { %693 = vsyncadd (%p926_p6), %s211_s23, 4294967168  ;;  %v715_v0 = vmov 0.0   ;;  %v243_v1 = vld [vmem:[%s853_s15] sm:$0xf]  ;;  %v247_v4 = vld [vmem:[%s853_s15 + $0x4] sm:$0xf]  ;;  %v259_v10 = vlaneseq }
  0x35   : > { %241 = vst [vmem:[#allocation2] sm:$0xf] %v715_v0  ;;  %557 = vmatprep.subr.mxu0 %v715_v0  ;;  %562 = vmatprep.subr.mxu1 %v715_v0  ;;  %vm251_vm0 = vcmask 1043456   ;;  %v256_v9 = vld [vmem:[%s912_s1] sm:$0xf]  ;;  %vm716_vm1 = vmmov 0  }
  0x36   : > { %558 = vmatpush3.msk.msra.mxu0 %vm251_vm0, %v256_v9  ;;  %559 = vmatprep.mubr.msk.f32.mxu0 %vm716_vm1, %v715_v0  ;;  %v260_v11 = vand.u32 127, %v259_v10  ;;  %v262_v12 = vshrl.u32 %v259_v10, 7  ;;  %vm265_vm2 = vcmask 31744   ;;  %v342_v17 = vld [vmem:[%s914_s3] sm:$0x3]  ;;  %vm348_vm3 = vcmask 1041408  }
  0x37   : > { %564 = vmatprep.mubr.msk.f32.mxu1 %vm716_vm1, %v715_v0  ;;  %563 = vmatpush3.msk.msra.mxu1 %vm348_vm3, %v342_v17  ;;  %v257_v18 = vld [vmem:[%s913_s2] sm:$0x1]  ;;  %vm344_vm4 = vcmask 15360   ;;  %v717_v33 = vmov 839922192   ;;  %v428_v37 = vld [vmem:[%s853_s15] sm:$0xff] }
  0x38   : > { %v263_v13 = vsub.s32 %v260_v11, %v262_v12  ;;  %v343_v23 = vld [vmem:[%s915_s4] sm:$0x1]  ;;  %v431_v30 = vsub.s32 0, %v262_v12  ;;  %v438_v34 = vunpack.c.l.s4 %v717_v33  ;;  %s552_s7 = sshll.u32 %s770_s22, 7  ;;  %s240_s9 = scalar_lea.vmem [#allocation6], %s539_s17 }
  0x39   : > { %s462_s10 = sshll.u32 %s240_s9, 4  ;;  %s460_s29 = scalar_lea.hbm %s916_s5, %s552_s7  ;;  %s463_s10 = int_to_ptr.vmem [resolvable:$true] %s462_s10 }
  0x3a   : > { %v439_v35 = vunpack.c.0.s8 %v438_v34  ;;  %s448_s12 = scalar_lea.sflag [#allocation5], %s847_s13  ;;  %s648_s14 = scalar_lea.vmem %s463_s10, 128 }
  0x3b   : > { %p649_p11 = scmp.ne.s32.totalorder %s463_s10, %s648_s14  ;;  %p927_p12 = scmp.ne.s32.totalorder %s921_s30, 0 }
  0x3c   : > { %v242_v2 = vld [vmem:[#allocation2] sm:$0xf]  ;;  %v442_v36 = vsub.s32 %v439_v35, %v262_v12  ;;  %s718_s15 = smov [#allocation6]  }
  0x3d   : > { %v244_v3 = vadd.f32 %v243_v1, %v242_v2  ;;  %p650_p13 = pnand %p649_p11, %p927_p12  ;;  %s652_s16 = sshll.u32 %s718_s15, 4  ;;  %s653_s16 = int_to_ptr.vmem [resolvable:$false] %s652_s16 }
  0x3e   : > { %s654_s22 = scalar_lea.vmem %s653_s16, 256  ;;  %p655_p3 = scmp.lt.s32.totalorder %s463_s10, %s653_s16 }
  0x3f   : > { %245 = vst [vmem:[#allocation2] sm:$0xf] %v244_v3  ;;  %p651_p1 = pneg %p650_p13  ;;  %p656_p5 = scmp.lt.s32.totalorder %s654_s22, %s648_s14 }
  0x41   : > { %p657_p8 = por %p656_p5, %p655_p3 }
  0x43   : > { %p658_p10 = pnand %p657_p8, %p651_p1 }
  0x46   : > { %v246_v5 = vld [vmem:[#allocation2] sm:$0xf] }
  0x47   : > { %v248_v6 = vadd.f32 %v247_v4, %v246_v5 }
  0x49   : > { %249 = vst [vmem:[#allocation2] sm:$0xf] %v248_v6 }
  0x50   : > { %v250_v7 = vld [vmem:[#allocation2] sm:$0xf] }
  0x51   : > { %v252_v8 = vsel %vm251_vm0, %v250_v7, 0.0 }
  0x52   : > { %253 = vadd.xlane.f32.xlu0 %v252_v8 }
  0xdb   : > { %v254_v14 = vpop.xlane.xlu0 %253 }
  0xdc   : > { %v255_v15 = vmul.f32 0.00390625, %v254_v14 }
  0xde   : > { %v264_v16 = vrot.slane %v255_v15, %v263_v13 }
  0xe0   : > { %560 = vmatmul.mubr.msk.f32.vlgmr.msra.gmra.mxu0 %vm265_vm2, %v264_v16 }
 0x1a0   : > { %v337_v19 = vpop.f32.mrf.mxu0 }
 0x1a1   : > { %v338_v20 = vadd.f32 %v337_v19, %v257_v18 }
 0x1a2   : > { %v561_v21 = vpop.f32.mrf.mxu0 }
 0x1a3   : > { %v341_v22 = vmax.f32 %v338_v20, 0.0 }
 0x1a5   : > { %565 = vmatmul.mubr.msk.f32.vlgmr.msra.gmra.mxu1 %vm344_vm4, %v341_v22 }
 0x265   : > { %v418_v24 = vpop.f32.mrf.mxu1 }
 0x266   : > { %v419_v25 = vadd.f32 %v418_v24, %v343_v23 }
 0x267   : > { %v566_v26 = vpop.f32.mrf.mxu1 }
 0x268   : > { %v545_v27 = vmul.f32 -1.442695, %v419_v25 }
 0x26a   : > { %616 = vpow2.f32 %v545_v27 }
 0x277   : > { %v617_v28 = vpop.eup %616 }
 0x278   : > { %v425_v29 = vadd.f32 1.0, %v617_v28 }
 0x27a   : > { %618 = vrcp.f32 %v425_v29 }
 0x287   : > { %v619_v31 = vpop.eup %618 }
 0x288   : > { %v432_v32 = vrot.slane %v619_v31, %v431_v30 }
 0x28a   : > { %434 = vbcast.lane.b32.xlu0 %v432_v32, 256 }
 0x2fc   : > { %v435_v38 = vpop.permute.xlu0 %434 }
 0x2fd   : > { %v443_v39 = vrot.slane %v435_v38, %v442_v36 }
 0x2ff   : > { %v445_v40 = vmul.f32 %v443_v39, %v428_v37 }
 0x301   : > { %446 = vst [vmem:[%s240_s9] sm:$0xff] %v445_v40 }
 0x302   : > { %661 = shalt.err (!%p658_p10)
}
 0x303   : > { %s662_s17 = scalar_lea.hbm %s460_s29, 128  ;;  %s666_s26 = scalar_lea.hbm %s916_s5, 256 }
 0x304   : > { %p663_p2 = scmp.ne.s32.totalorder %s460_s29, %s662_s17  ;;  %p667_p7 = scmp.lt.s32.totalorder %s460_s29, %s916_s5 }
 0x305   : > { %p668_p0 = scmp.lt.s32.totalorder %s666_s26, %s662_s17 }
 0x306   : > { %p664_p4 = pnand %p663_p2, %p927_p12 }
 0x307   : > { %p669_p6 = por %p668_p0, %p667_p7 }
 0x308   : > { %p665_p9 = pneg %p664_p4 }
 0x30a   : > { %p670_p11 = pnand %p669_p6, %p665_p9 }
 0x30c   : > { %673 = shalt.err (!%p670_p11)
}
 0x30d   : > { %569 = dma.vmem_to_hbm [thread:$0]  (%p927_p12), %s463_s10, 128, %s460_s29, %s448_s12  }
 0x30e PF: > { %s474_s7 = sand.u32 1, %s700_s18   ;;  %p928_p13 = scmp.ne.s32.totalorder %s922_s6, 0 }
 0x30f   : > { %p929_p1 = scmp.ge.s32.totalorder %s712_s21, 2  ;;  %s475_s9 = scalar_lea.sflag [#allocation5], %s474_s7 }
 0x311   : > { %p576_p3 = pnand %p929_p1, %p928_p13 }
 0x313   : > { %p577_p5 = pneg %p576_p3 }
 0x315   : > { %695 = dma.done.wait (%p577_p5), %s475_s9, 128  }
 0x316   : > { %697 = vsyncadd (%p577_p5), %s475_s9, 4294967168  ;;  %p18_p8 = scmp.ge.s32.totalorder %s774_s24, 4   ;;  %s930_s18 = smov %s704_s19 }
 0x317   : > { %s931_s19 = smov %s708_s20  ;;  %s932_s20 = smov %s786_s27 }
 0x318   : > { %s933_s21 = smov %s774_s24  ;;  %20 = sbr.rel (!%p18_p8) target bundleno = 5 (0x5), region = 85 }
 0x31d   :  { %480 = vsyncpa [#allocation4], 1 }
 0x31e   :  { %482 = vsyncpa [#allocation4 + $0x1], 1 }
 0x31f   :  { %483 = vsyncpa [#allocation5], 1 }
 0x320   :  { %485 = vsyncpa [#allocation5 + $0x1], 1 }

</bundles_post_ra>
